<compile_context>
chip_gen: v7x
topology: tpu7x:2x2x1
jax: 0.10.0
libtpu: 0.0.40
codegen_flags: <defaults>
</compile_context>

<pallas_src>
import functools

import jax
import jax.numpy as jnp
from jax.experimental import pallas as pl
from jax.experimental.pallas import tpu as pltpu


# ----------------------------------------------------------------------------
# Fused policy pixel-path kernel
#   inputs  : x (B,Cin,HW), mask (B,1,HW), ids (B,1,seq), weights (transposed)
#   outputs : log-softmax logits (B,C,HW), latent (B,D,1)
# ----------------------------------------------------------------------------
def _fused_policy_kernel(num_classes, hw,
                         x_ref, mask_ref, w_all_ref, bconv_ref,
                         wtextT_ref, btext_ref, ids_ref, blat_ref,
                         logits_ref, latent_ref, lat_acc):
    p = pl.program_id(1)
    C = num_classes

    # mask the grid in-kernel (no separate XLA elementwise pass over HBM)
    x = x_ref[0] * mask_ref[0]                                     # (Cin, T)

    # combined per-pixel linear: conv head + latent projection in one MXU pass
    # bf16 inputs, f32 accumulation (v6e/v7x bf16-native MXU).
    out = jnp.dot(w_all_ref[...].astype(jnp.bfloat16),
                  x.astype(jnp.bfloat16),
                  preferred_element_type=jnp.float32)              # (C+D, T)
    pred = out[:C, :]                                              # (C, T)
    lat = out[C:, :]                                               # (D, T)

    # text conditioning bias (per batch): tiny VPU multiply + lane reduction
    bias = (jnp.sum(wtextT_ref[...] * ids_ref[0], axis=-1, keepdims=True)
            + btext_ref[...] + bconv_ref[...])                     # (C, 1)
    pred = pred + bias                                             # bcast lanes

    # log_softmax over channels (sublane axis), numerically stable
    m = jnp.max(pred, axis=0, keepdims=True)                       # (1, T)
    shifted = pred - m
    lse = jnp.log(jnp.sum(jnp.exp(shifted), axis=0, keepdims=True))
    logits_ref[0] = shifted - lse                                  # (C, T)

    # latent mean-pool over pixels: accumulate in VMEM scratch across the
    # pixel (reduction) grid axis; finalize on the last step.
    @pl.when(p == 0)
    def _():
        lat_acc[...] = jnp.zeros_like(lat_acc)

    lat_acc[...] += jnp.sum(lat, axis=-1, keepdims=True)           # (D, 1)

    @pl.when(p == pl.num_programs(1) - 1)
    def _():
        latent_ref[0] = lat_acc[...] * (1.0 / hw) + blat_ref[...]  # (D, 1)


def _pick_pixel_tile(hw):
    """Largest lane-dense tile (multiple of 128) dividing hw, else full hw."""
    for t in (512, 256, 128):
        if hw % t == 0:
            return t
    return hw  # block dim == full array dim is always allowed


def fused_policy_pixels(x_cl, mask_cl, ids_cl, w_all_T, b_conv_col,
                        w_text_T, b_text_col, b_lat_col,
                        *, num_classes, latent_dim):
    B, Cin, HW = x_cl.shape
    C, D = num_classes, latent_dim
    seq = ids_cl.shape[-1]
    T = _pick_pixel_tile(HW)
    n_p = HW // T

    kernel = functools.partial(_fused_policy_kernel, C, HW)
    logits_rows, latent3 = pl.pallas_call(
        kernel,
        out_shape=(jax.ShapeDtypeStruct((B, C, HW), jnp.float32),
                   jax.ShapeDtypeStruct((B, D, 1), jnp.float32)),
        grid=(B, n_p),
        in_specs=[
            pl.BlockSpec((1, Cin, T), lambda b, p: (b, 0, p)),      # x
            pl.BlockSpec((1, 1, T), lambda b, p: (b, 0, p)),        # mask
            pl.BlockSpec((C + D, Cin), lambda b, p: (0, 0)),        # w_all_T
            pl.BlockSpec((C, 1), lambda b, p: (0, 0)),              # b_conv
            pl.BlockSpec((C, seq), lambda b, p: (0, 0)),            # w_text_T
            pl.BlockSpec((C, 1), lambda b, p: (0, 0)),              # b_text
            pl.BlockSpec((1, 1, seq), lambda b, p: (b, 0, 0)),      # ids
            pl.BlockSpec((D, 1), lambda b, p: (0, 0)),              # b_lat
        ],
        out_specs=(
            pl.BlockSpec((1, C, T), lambda b, p: (b, 0, p)),        # logits
            pl.BlockSpec((1, D, 1), lambda b, p: (b, 0, 0)),        # latent
        ),
        scratch_shapes=[pltpu.VMEM((D, 1), jnp.float32)],
        compiler_params=pltpu.CompilerParams(
            dimension_semantics=("parallel", "arbitrary"),
            vmem_limit_bytes=32 * 1024 * 1024,
        ),
    )(x_cl, mask_cl, w_all_T, b_conv_col, w_text_T, b_text_col, ids_cl,
      b_lat_col)
    return logits_rows, latent3


# ----------------------------------------------------------------------------
# Value head: Linear(latent_dim, 256) -> ReLU -> Linear(256, 1), fused.
# Second Linear(256,1) is a VPU multiply + lane reduction (no M=1 MXU pass);
# the scalar bias lives in SMEM.
# ----------------------------------------------------------------------------
def _value_head_kernel(x_ref, w1_ref, b1_ref, w2r_ref, b2_ref, o_ref):
    h = jnp.dot(x_ref[...].astype(jnp.bfloat16),
                w1_ref[...].astype(jnp.bfloat16),
                preferred_element_type=jnp.float32) + b1_ref[...]
    h = jnp.maximum(h, 0.0)
    o_ref[...] = jnp.sum(h * w2r_ref[...], axis=-1, keepdims=True) + b2_ref[0, 0]


def pallas_value_head(latent, w1, b1, w2_row, b2):
    """latent: (B, D) f32 -> (B, 1) f32 value estimates."""
    B, D = latent.shape
    H = w1.shape[1]
    return pl.pallas_call(
        _value_head_kernel,
        out_shape=jax.ShapeDtypeStruct((B, 1), jnp.float32),
        in_specs=[
            pl.BlockSpec((B, D), lambda: (0, 0)),
            pl.BlockSpec((D, H), lambda: (0, 0)),
            pl.BlockSpec((1, H), lambda: (0, 0)),
            pl.BlockSpec((1, H), lambda: (0, 0)),
            pl.BlockSpec(memory_space=pltpu.MemorySpace.SMEM),
        ],
        out_specs=pl.BlockSpec((B, 1), lambda: (0, 0)),
        compiler_params=pltpu.CompilerParams(
            vmem_limit_bytes=32 * 1024 * 1024),
    )(latent, w1, b1, w2_row, b2)


# ----------------------------------------------------------------------------
# PPOPolicy forward / get_value
# ----------------------------------------------------------------------------
def ppo_forward(params, grid_nchw, mask, text_input, context_embedding=None):
    del context_embedding  # TODO(synk): map_embedding / context_rnn conditioning unused by synthetic base model
    B, Cin, H, W = grid_nchw.shape
    HW = H * W
    C = params["num_classes"]
    D = params["latent_dim"]

    # text_input expansion: v.expand(batch_size, -1) when leading dim is 1
    text_input = {
        k: (jnp.broadcast_to(v, (B,) + v.shape[1:])
            if (v.shape[0] == 1 and B > 1) else v)
        for k, v in text_input.items()
    }

    # torch.randint(0, timesteps, (B,)) equivalent (no_grad region).
    # TODO(synk): thread a fresh PRNG key per call; t is unused by the
    # synthetic base model, so the fixed key is harmless (and DCE'd) here.
    t = jax.random.randint(jax.random.PRNGKey(0), (B,), 0,
                           params["timesteps"], dtype=jnp.int32)
    del t

    # NCHW -> (B, Cin, HW): pure reshape (channels on sublanes, pixels on
    # lanes); no transposes anywhere in the forward pass.
    x_cl = grid_nchw.reshape(B, Cin, HW)
    mask_cl = mask.reshape(B, 1, HW).astype(grid_nchw.dtype)
    ids_cl = (text_input["input_ids"].astype(jnp.float32) / 100.0
              ).reshape(B, 1, -1)

    logits_rows, latent3 = fused_policy_pixels(
        x_cl, mask_cl, ids_cl,
        params["w_all_T"], params["b_conv_col"],
        params["w_text_T"], params["b_text_col"], params["b_lat_col"],
        num_classes=C, latent_dim=D)

    logits = logits_rows.reshape(B, C, H, W)   # free reshape back to NCHW
    latent = latent3.reshape(B, D)
    return logits, latent


def ppo_get_value(params, latent):
    flat_latent = latent.reshape(latent.shape[0], -1)
    return pallas_value_head(
        flat_latent,
        params["vh_w1"], params["vh_b1"],
        params["vh_w2_row"], params["vh_b2"],
    )


# ----------------------------------------------------------------------------
# Deterministic parameter construction
# ----------------------------------------------------------------------------
def make_params(cin, num_classes, latent_dim, seq_len, timesteps=1000):
    key = jax.random.PRNGKey(0)
    ks = jax.random.split(key, 8)
    f = jnp.float32
    w_conv = (0.1 * jax.random.normal(ks[0], (cin, num_classes))).astype(f)
    w_lat = (0.1 * jax.random.normal(ks[1], (cin, latent_dim))).astype(f)
    w_text = (0.1 * jax.random.normal(ks[2], (seq_len, num_classes))).astype(f)
    return {
        "timesteps": timesteps,
        "num_classes": num_classes,
        "latent_dim": latent_dim,
        # combined + transposed weights: pixels live on the lane axis, so the
        # per-pixel linear is (C+D, Cin) @ (Cin, T); conv head and latent
        # projection share a single MXU pass per tile.
        "w_all_T": jnp.concatenate([w_conv.T, w_lat.T], axis=0),   # (C+D, Cin)
        "b_conv_col": jnp.zeros((num_classes, 1), f),
        "w_text_T": w_text.T,                                      # (C, seq)
        "b_text_col": jnp.zeros((num_classes, 1), f),
        "b_lat_col": jnp.zeros((latent_dim, 1), f),
        # PPOPolicy.value_head: Linear(latent_dim, 256) -> ReLU -> Linear(256, 1)
        "vh_w1": (0.1 * jax.random.normal(ks[3], (latent_dim, 256))).astype(f),
        "vh_b1": jnp.zeros((1, 256), f),
        "vh_w2_row": (0.1 * jax.random.normal(ks[4], (256, 1))
                      ).astype(f).reshape(1, 256),
        "vh_b2": jnp.zeros((1, 1), f),
    }


if __name__ == "__main__":
    B, Cin, H, W = 2, 4, 16, 16
    num_classes, latent_dim, seq_len = 8, 32, 8

    params = make_params(Cin, num_classes, latent_dim, seq_len)

    key = jax.random.PRNGKey(0)
    k1, k2, k3 = jax.random.split(key, 3)
    grid = jax.random.normal(k1, (B, Cin, H, W), dtype=jnp.float32)
    mask = (jax.random.uniform(k2, (B, 1, H, W)) > 0.3).astype(jnp.float32)
    text_input = {
        "input_ids": jax.random.randint(k3, (1, seq_len), 0, 100,
                                        dtype=jnp.int32),
        "attention_mask": jnp.ones((1, seq_len), dtype=jnp.int32),
    }

    fwd = jax.jit(functools.partial(ppo_forward, params))
    logits, latent = fwd(grid, mask, text_input)
    values = jax.jit(functools.partial(ppo_get_value, params))(latent)

    jax.block_until_ready((logits, latent, values))

    assert logits.shape == (B, num_classes, H, W)
    assert latent.shape == (B, latent_dim)
    assert values.shape == (B, 1)
    # log_softmax sanity: exp(logits) sums to 1 over the channel axis
    assert jnp.allclose(jnp.sum(jnp.exp(logits), axis=1), 1.0, atol=1e-4)

    print("KERNEL_OK")
</pallas_src>

<mosaic_0001>
module attributes {stable_mosaic.version = 11 : i64} {
  func.func @_fused_policy_kernel(%arg0: i32, %arg1: i32, %arg2: memref<1x4x256xf32, #tpu.memory_space<vmem>>, %arg3: memref<1x1x256xf32, #tpu.memory_space<vmem>>, %arg4: memref<40x4xf32, #tpu.memory_space<vmem>>, %arg5: memref<8x1xf32, #tpu.memory_space<vmem>>, %arg6: memref<8x8xf32, #tpu.memory_space<vmem>>, %arg7: memref<8x1xf32, #tpu.memory_space<vmem>>, %arg8: memref<1x1x8xf32, #tpu.memory_space<vmem>>, %arg9: memref<32x1xf32, #tpu.memory_space<vmem>>, %arg10: memref<1x8x256xf32, #tpu.memory_space<vmem>>, %arg11: memref<1x32x1xf32, #tpu.memory_space<vmem>>, %arg12: memref<32x1xf32, #tpu.memory_space<vmem>>) attributes {dimension_semantics = [#tpu.dimension_semantics<parallel>, #tpu.dimension_semantics<arbitrary>], iteration_bounds = array<i64: 2, 1>, scalar_prefetch = 0 : i64, scratch_operands = 1 : i64, tpu.core_type = #tpu.core_type<tc>, window_params = [{transform_indices = @transform_0, window_bounds = array<i64: 1, 4, 256>}, {transform_indices = @transform_1, window_bounds = array<i64: 1, 1, 256>}, {pipeline_mode = #tpu.pipeline_mode<synchronous>, transform_indices = @transform_2, window_bounds = array<i64: 40, 4>}, {pipeline_mode = #tpu.pipeline_mode<synchronous>, transform_indices = @transform_3, window_bounds = array<i64: 8, 1>}, {pipeline_mode = #tpu.pipeline_mode<synchronous>, transform_indices = @transform_4, window_bounds = array<i64: 8, 8>}, {pipeline_mode = #tpu.pipeline_mode<synchronous>, transform_indices = @transform_5, window_bounds = array<i64: 8, 1>}, {transform_indices = @transform_6, window_bounds = array<i64: 1, 1, 8>}, {pipeline_mode = #tpu.pipeline_mode<synchronous>, transform_indices = @transform_7, window_bounds = array<i64: 32, 1>}, {transform_indices = @transform_8, window_bounds = array<i64: 1, 8, 256>}, {transform_indices = @transform_9, window_bounds = array<i64: 1, 32, 1>}]} {
    %c0 = arith.constant 0 : index
    %c0_0 = arith.constant 0 : index
    %c0_1 = arith.constant 0 : index
    %0 = vector.load %arg2[%c0, %c0_0, %c0_1] : memref<1x4x256xf32, #tpu.memory_space<vmem>>, vector<1x4x256xf32>
    %1 = vector.shape_cast %0 : vector<1x4x256xf32> to vector<4x256xf32>
    %c0_2 = arith.constant 0 : index
    %c0_3 = arith.constant 0 : index
    %c0_4 = arith.constant 0 : index
    %2 = vector.load %arg3[%c0_2, %c0_3, %c0_4] : memref<1x1x256xf32, #tpu.memory_space<vmem>>, vector<1x1x256xf32>
    %3 = vector.shape_cast %2 : vector<1x1x256xf32> to vector<1x256xf32>
    %4 = vector.broadcast %3 : vector<1x256xf32> to vector<4x256xf32>
    %5 = arith.mulf %1, %4 : vector<4x256xf32>
    %c0_5 = arith.constant 0 : index
    %c0_6 = arith.constant 0 : index
    %6 = vector.load %arg4[%c0_5, %c0_6] : memref<40x4xf32, #tpu.memory_space<vmem>>, vector<40x4xf32>
    %7 = arith.truncf %6 : vector<40x4xf32> to vector<40x4xbf16>
    %8 = arith.truncf %5 : vector<4x256xf32> to vector<4x256xbf16>
    %cst = arith.constant dense<0.000000e+00> : vector<40x256xf32>
    %9 = tpu.matmul %7, %8, %cst {dimension_numbers = #tpu.dot_dimension_numbers<[1], [0], [0], [1], [0, 0, 1, 1], [], []>} : vector<40x4xbf16>, vector<4x256xbf16>, vector<40x256xf32> -> vector<40x256xf32>
    %10 = vector.extract_strided_slice %9 {offsets = [0, 0], sizes = [8, 256], strides = [1, 1]} : vector<40x256xf32> to vector<8x256xf32>
    %11 = vector.extract_strided_slice %9 {offsets = [8, 0], sizes = [32, 256], strides = [1, 1]} : vector<40x256xf32> to vector<32x256xf32>
    %c0_7 = arith.constant 0 : index
    %c0_8 = arith.constant 0 : index
    %12 = vector.load %arg6[%c0_7, %c0_8] : memref<8x8xf32, #tpu.memory_space<vmem>>, vector<8x8xf32>
    %c0_9 = arith.constant 0 : index
    %c0_10 = arith.constant 0 : index
    %c0_11 = arith.constant 0 : index
    %13 = vector.load %arg8[%c0_9, %c0_10, %c0_11] : memref<1x1x8xf32, #tpu.memory_space<vmem>>, vector<1x1x8xf32>
    %14 = vector.shape_cast %13 : vector<1x1x8xf32> to vector<1x8xf32>
    %15 = vector.broadcast %14 : vector<1x8xf32> to vector<8x8xf32>
    %16 = arith.mulf %12, %15 : vector<8x8xf32>
    %cst_12 = arith.constant dense<0.000000e+00> : vector<8xf32>
    %17 = vector.multi_reduction <add>, %16, %cst_12 [1] : vector<8x8xf32> to vector<8xf32>
    %18 = vector.shape_cast %17 : vector<8xf32> to vector<8x1xf32>
    %c0_13 = arith.constant 0 : index
    %c0_14 = arith.constant 0 : index
    %19 = vector.load %arg7[%c0_13, %c0_14] : memref<8x1xf32, #tpu.memory_space<vmem>>, vector<8x1xf32>
    %20 = arith.addf %18, %19 : vector<8x1xf32>
    %c0_15 = arith.constant 0 : index
    %c0_16 = arith.constant 0 : index
    %21 = vector.load %arg5[%c0_15, %c0_16] : memref<8x1xf32, #tpu.memory_space<vmem>>, vector<8x1xf32>
    %22 = arith.addf %20, %21 : vector<8x1xf32>
    %23 = vector.broadcast %22 : vector<8x1xf32> to vector<8x256xf32>
    %24 = arith.addf %10, %23 : vector<8x256xf32>
    %cst_17 = arith.constant dense<0xFF800000> : vector<256xf32>
    %25 = vector.multi_reduction <maximumf>, %24, %cst_17 [0] : vector<8x256xf32> to vector<256xf32>
    %26 = vector.shape_cast %25 : vector<256xf32> to vector<1x256xf32>
    %27 = vector.broadcast %26 : vector<1x256xf32> to vector<8x256xf32>
    %28 = arith.subf %24, %27 : vector<8x256xf32>
    %29 = math.exp %28 : vector<8x256xf32>
    %cst_18 = arith.constant dense<0.000000e+00> : vector<256xf32>
    %30 = vector.multi_reduction <add>, %29, %cst_18 [0] : vector<8x256xf32> to vector<256xf32>
    %31 = vector.shape_cast %30 : vector<256xf32> to vector<1x256xf32>
    %32 = math.log %31 : vector<1x256xf32>
    %33 = vector.broadcast %32 : vector<1x256xf32> to vector<8x256xf32>
    %34 = arith.subf %28, %33 : vector<8x256xf32>
    %c0_19 = arith.constant 0 : index
    %c0_20 = arith.constant 0 : index
    %c0_21 = arith.constant 0 : index
    %35 = vector.load %arg10[%c0_19, %c0_20, %c0_21] : memref<1x8x256xf32, #tpu.memory_space<vmem>>, vector<1x8x256xf32>
    %36 = vector.shape_cast %35 : vector<1x8x256xf32> to vector<8x256xf32>
    %37 = vector.shape_cast %34 : vector<8x256xf32> to vector<1x8x256xf32>
    tpu.vector_store %arg10[%c0_19, %c0_20, %c0_21], %37 {strides = array<i32>} : memref<1x8x256xf32, #tpu.memory_space<vmem>>, vector<1x8x256xf32>,
    %c0_i32 = arith.constant 0 : i32
    %38 = arith.cmpi eq, %arg1, %c0_i32 : i32
    %39 = arith.extui %38 : i1 to i32
    %c0_i32_22 = arith.constant 0 : i32
    %40 = arith.cmpi ne, %39, %c0_i32_22 : i32
    scf.if %40 {
      %cst_30 = arith.constant 0.000000e+00 : f32
      %49 = vector.broadcast %cst_30 : f32 to vector<32x1xf32>
      %c0_31 = arith.constant 0 : index
      %c0_32 = arith.constant 0 : index
      %50 = vector.load %arg12[%c0_31, %c0_32] : memref<32x1xf32, #tpu.memory_space<vmem>>, vector<32x1xf32>
      tpu.vector_store %arg12[%c0_31, %c0_32], %49 {strides = array<i32>} : memref<32x1xf32, #tpu.memory_space<vmem>>, vector<32x1xf32>,
    } else {
    }
    %c0_23 = arith.constant 0 : index
    %c0_24 = arith.constant 0 : index
    %41 = vector.load %arg12[%c0_23, %c0_24] : memref<32x1xf32, #tpu.memory_space<vmem>>, vector<32x1xf32>
    %cst_25 = arith.constant dense<0.000000e+00> : vector<32xf32>
    %42 = vector.multi_reduction <add>, %11, %cst_25 [1] : vector<32x256xf32> to vector<32xf32>
    %43 = vector.shape_cast %42 : vector<32xf32> to vector<32x1xf32>
    %44 = arith.addf %41, %43 : vector<32x1xf32>
    %c0_26 = arith.constant 0 : index
    %c0_27 = arith.constant 0 : index
    %45 = vector.load %arg12[%c0_26, %c0_27] : memref<32x1xf32, #tpu.memory_space<vmem>>, vector<32x1xf32>
    tpu.vector_store %arg12[%c0_26, %c0_27], %44 {strides = array<i32>} : memref<32x1xf32, #tpu.memory_space<vmem>>, vector<32x1xf32>,
    %c0_i32_28 = arith.constant 0 : i32
    %46 = arith.cmpi eq, %arg1, %c0_i32_28 : i32
    %47 = arith.extui %46 : i1 to i32
    %c0_i32_29 = arith.constant 0 : i32
    %48 = arith.cmpi ne, %47, %c0_i32_29 : i32
    scf.if %48 {
      %c0_30 = arith.constant 0 : index
      %c0_31 = arith.constant 0 : index
      %49 = vector.load %arg12[%c0_30, %c0_31] : memref<32x1xf32, #tpu.memory_space<vmem>>, vector<32x1xf32>
      %cst_32 = arith.constant 3.906250e-03 : f32
      %50 = vector.broadcast %cst_32 : f32 to vector<32x1xf32>
      %51 = arith.mulf %49, %50 : vector<32x1xf32>
      %c0_33 = arith.constant 0 : index
      %c0_34 = arith.constant 0 : index
      %52 = vector.load %arg9[%c0_33, %c0_34] : memref<32x1xf32, #tpu.memory_space<vmem>>, vector<32x1xf32>
      %53 = arith.addf %51, %52 : vector<32x1xf32>
      %c0_35 = arith.constant 0 : index
      %c0_36 = arith.constant 0 : index
      %c0_37 = arith.constant 0 : index
      %54 = vector.load %arg11[%c0_35, %c0_36, %c0_37] : memref<1x32x1xf32, #tpu.memory_space<vmem>>, vector<1x32x1xf32>
      %55 = vector.shape_cast %54 : vector<1x32x1xf32> to vector<32x1xf32>
      %56 = vector.shape_cast %53 : vector<32x1xf32> to vector<1x32x1xf32>
      tpu.vector_store %arg11[%c0_35, %c0_36, %c0_37], %56 {strides = array<i32>} : memref<1x32x1xf32, #tpu.memory_space<vmem>>, vector<1x32x1xf32>,
    } else {
    }
    return
  }
  func.func @transform_0(%arg0: i32, %arg1: i32) -> (i32, i32, i32) {
    %c0_i32 = arith.constant 0 : i32
    %c0_i32_0 = arith.constant 0 : i32
    return %arg0, %c0_i32, %arg1 : i32, i32, i32
  }
  func.func @transform_1(%arg0: i32, %arg1: i32) -> (i32, i32, i32) {
    %c0_i32 = arith.constant 0 : i32
    %c0_i32_0 = arith.constant 0 : i32
    return %arg0, %c0_i32, %arg1 : i32, i32, i32
  }
  func.func @transform_2(%arg0: i32, %arg1: i32) -> (i32, i32) {
    %c0_i32 = arith.constant 0 : i32
    %c0_i32_0 = arith.constant 0 : i32
    %c0_i32_1 = arith.constant 0 : i32
    return %c0_i32, %c0_i32_0 : i32, i32
  }
  func.func @transform_3(%arg0: i32, %arg1: i32) -> (i32, i32) {
    %c0_i32 = arith.constant 0 : i32
    %c0_i32_0 = arith.constant 0 : i32
    %c0_i32_1 = arith.constant 0 : i32
    return %c0_i32, %c0_i32_0 : i32, i32
  }
  func.func @transform_4(%arg0: i32, %arg1: i32) -> (i32, i32) {
    %c0_i32 = arith.constant 0 : i32
    %c0_i32_0 = arith.constant 0 : i32
    %c0_i32_1 = arith.constant 0 : i32
    return %c0_i32, %c0_i32_0 : i32, i32
  }
  func.func @transform_5(%arg0: i32, %arg1: i32) -> (i32, i32) {
    %c0_i32 = arith.constant 0 : i32
    %c0_i32_0 = arith.constant 0 : i32
    %c0_i32_1 = arith.constant 0 : i32
    return %c0_i32, %c0_i32_0 : i32, i32
  }
  func.func @transform_6(%arg0: i32, %arg1: i32) -> (i32, i32, i32) {
    %c0_i32 = arith.constant 0 : i32
    %c0_i32_0 = arith.constant 0 : i32
    %c0_i32_1 = arith.constant 0 : i32
    return %arg0, %c0_i32, %c0_i32_0 : i32, i32, i32
  }
  func.func @transform_7(%arg0: i32, %arg1: i32) -> (i32, i32) {
    %c0_i32 = arith.constant 0 : i32
    %c0_i32_0 = arith.constant 0 : i32
    %c0_i32_1 = arith.constant 0 : i32
    return %c0_i32, %c0_i32_0 : i32, i32
  }
  func.func @transform_8(%arg0: i32, %arg1: i32) -> (i32, i32, i32) {
    %c0_i32 = arith.constant 0 : i32
    %c0_i32_0 = arith.constant 0 : i32
    return %arg0, %c0_i32, %arg1 : i32, i32, i32
  }
  func.func @transform_9(%arg0: i32, %arg1: i32) -> (i32, i32, i32) {
    %c0_i32 = arith.constant 0 : i32
    %c0_i32_0 = arith.constant 0 : i32
    %c0_i32_1 = arith.constant 0 : i32
    return %arg0, %c0_i32, %c0_i32_0 : i32, i32, i32
  }
}

</mosaic_0001>

<bundles_post_ra>
// kernel: ppo_forward.1
= control target key start
LH: loop header
LB: loop body
LE: loop exit
PB: predicated region body
PF: predicated region fallthrough
CT: control target
= control target key end

     0   :  { %s936_s30 = smov 0   ;;  %s938_s10 = smov 0   ;;  %s1033_s0 = inlined_call_operand.vmem [shape: f32[2,4,256], index: 0, kind: input, shape index: {}]   ;;  %s1034_s1 = inlined_call_operand.vmem [shape: f32[2,1,256], index: 1, kind: input, shape index: {}]   ;;  %s1035_s2 = inlined_call_operand.vmem [shape: f32[40,4], index: 2, kind: input, shape index: {}]   ;;  %s1036_s3 = inlined_call_operand.vmem [shape: f32[8,1], index: 3, kind: input, shape index: {}, may-alias: {3,5}]   ;;  %s1037_s4 = inlined_call_operand.vmem [shape: f32[8,8], index: 4, kind: input, shape index: {}]   ;;  %s1038_s5 = inlined_call_operand.vmem [shape: f32[8,1], index: 5, kind: input, shape index: {}, may-alias: {3,5}]   ;;  %s1039_s6 = inlined_call_operand.vmem [shape: f32[2,1,8], index: 6, kind: input, shape index: {}]   ;;  %s1040_s7 = inlined_call_operand.vmem [shape: f32[32,1], index: 7, kind: input, shape index: {}]   ;;  %s1041_s8 = inlined_call_operand.vmem [shape: f32[2,8,256], index: 8, kind: output, shape index: {0}]   ;;  %s1042_s9 = inlined_call_operand.vmem [shape: f32[2,32,1], index: 9, kind: output, shape index: {1}]  }
   0x1   :  { %s940_s11 = smov 0  }
   0x2 LB: > { %s32_s12 = sadd.s32 1, %s878_s10  ;;  %p805_p0 = scmp.ge.s32.totalorder %s882_s11, 1  ;;  %s882_s11 = sphi %s940_s11, %s20_s11   ;;  %s878_s10 = sphi %s938_s10, %s1044_s10   ;;  %s874_s30 = sphi %s936_s30, %s1043_s30  }
   0x3   : > { %p34_p1 = scmp.ge.s32.totalorder %s32_s12, 2  ;;  %p335_p2 = scmp.lt.s32.totalorder %s882_s11, 3 }
   0x5   : > { %s1046_s12 = smov (%p34_p1, %s32_s12), 0  ;;  %p336_p3 = pnand %p805_p0, %p335_p2 }
   0x6   : > { %p396_p4 = scmp.lt.s32.totalorder (!%p336_p3), %s874_s30, 1  ;;  %v436_v0 = vlaneseq (!%p336_p3)  ;;  %v884_v1 = vmov (!%p336_p3), 0   ;;  %v538_v3 = vld [vmem:[%s1037_s4] sm:$0xff] (!%p336_p3)  ;;  %vm547_vm0 = vcmask (!%p336_p3), 64512   ;;  %vm470_vm1 = vcmask (!%p336_p3), 1041408   ;;  %v448_v18 = vld [vmem:[%s1035_s2 + $0x8] sm:$0xff] (!%p336_p3) }
   0x7   : > { %339 = sbr.rel (%p336_p3) target bundleno = 417 (0x1a1), region = 52  ;;  %509 = vmatprep.mubr.bf16.mxu0 (!%p336_p3), %v884_v1  ;;  %519 = vmatprep.mubr.bf16.mxu1 (!%p336_p3), %v884_v1  ;;  %v447_v17 = vld [vmem:[%s1035_s2] sm:$0xff] (!%p336_p3)  ;;  %v449_v19 = vld [vmem:[%s1035_s2 + $0x10] sm:$0xff] (!%p336_p3)  ;;  %v450_v20 = vld [vmem:[%s1035_s2 + $0x18] sm:$0xff] (!%p336_p3)  ;;  %vm460_vm2 = vcmask (!%p336_p3), 31744   ;;  %vm604_vm3 = vcmask (!%p336_p3), 7168  }
   0x8   : > { %v437_v2 = vshrl.u32 (!%p336_p3), %v436_v0, 7  ;;  %851 = vset.pattern.permute.xlu0 (!%p336_p3), %v884_v1  ;;  %v452_v23 = vpack.c.bf16 (!%p336_p3), %v448_v18, %v447_v17  ;;  %v453_v24 = vpack.c.bf16 (!%p336_p3), %v450_v20, %v449_v19  ;;  %v451_v25 = vld [vmem:[%s1035_s2 + $0x20] sm:$0xff] (!%p336_p3)  ;;  %v885_v32 = vmov (!%p336_p3), 0.0  }
   0x9   : > { %v454_v26 = vpack.c.bf16 (!%p336_p3), %v451_v25, %v451_v25  ;;  %v551_v27 = vld [vmem:[%s1038_s5] sm:$0xff] (!%p336_p3)  ;;  %606 = vst.msk [vmem:[#allocation2 + $0x8] sm:$0xff] (!%p336_p3), %vm604_vm3, %v885_v32  ;;  %605 = vst.msk [vmem:[#allocation2] sm:$0xff] (!%p336_p3), %vm604_vm3, %v885_v32 }
   0xa   : > { %v438_v5 = vsub.s32 (!%p336_p3), 0, %v437_v2  ;;  %v442_v6 = vsub.s32 (!%p336_p3), 1, %v437_v2  ;;  %v553_v28 = vld [vmem:[%s1036_s3] sm:$0xff] (!%p336_p3)  ;;  %607 = vst.msk [vmem:[#allocation2 + $0x10] sm:$0xff] (!%p336_p3), %vm604_vm3, %v885_v32  ;;  %608 = vst.msk [vmem:[#allocation2 + $0x18] sm:$0xff] (!%p336_p3), %vm604_vm3, %v885_v32 }
   0xe   : > { %s1048_s30 = smov (!%p396_p4, %s874_s30), 1 }
   0xf   : > { %s416_s17 = scalar_lea.vmem %s1039_s6, %s1048_s30  ;;  %s820_s18 = sshll.u32 %s1048_s30, 3 }
  0x10   : > { %v817_v4 = vld [vmem:[%s416_s17] ss:$0 sm:$0xff]  ;;  %s808_s19 = sshll.u32 %s1048_s30, 1  ;;  %s403_s22 = scalar_lea.vmem %s1033_s0, %s820_s18 }
  0x11   : > { %v546_v7 = vmul.f32 %v817_v4, %v538_v3  ;;  %s412_s25 = scalar_lea.vmem %s1034_s1, %s808_s19  ;;  %v433_v12 = vld [vmem:[%s403_s22] sm:$0xff]  ;;  %s821_s23 = sshll.u32 %s1048_s30, 4 }
  0x12   : > { %v434_v9 = vld [vmem:[%s412_s25] sm:$0x3]  ;;  %s425_s26 = scalar_lea.vmem %s1041_s8, %s821_s23  ;;  %s822_s27 = sshll.u32 %s1048_s30, 5 }
  0x13   : > { %v548_v8 = vsel %vm547_vm0, %v546_v7, 0.0  ;;  %v439_v10 = vrot.slane %v434_v9, %v438_v5  ;;  %v443_v11 = vrot.slane %v434_v9, %v442_v6  ;;  %s431_s15 = scalar_lea.vmem %s1042_s9, %s822_s27 }
  0x14   : > { %549 = vadd.xlane.f32.xlu0 %v548_v8 }
  0x15   : > { %v444_v13 = vcombine.low %v439_v10, %v443_v11 }
  0x17   : > { %v446_v14 = vmul.f32 %v444_v13, %v433_v12 }
  0x19   : > { %v456_v15 = vcombine.high %v446_v14, %v446_v14  ;;  %v458_v16 = vpack.c.bf16 %v446_v14, %v446_v14 }
  0x1b   : > { %v459_v21 = vpack.c.bf16 %v456_v15, %v456_v15  ;;  %v472_v22 = vsel %vm470_vm1, %v458_v16, 0 }
  0x1d   : > { %813 = vmatprep.subr.msk.bf16.mxu0 %vm470_vm1, %v459_v21  ;;  %823 = vmatprep.subr.msk.bf16.mxu1 %vm470_vm1, %v459_v21 }
  0x1e   : > { %478 = vmatpush1.bf16.msra.mxu0 %v472_v22  ;;  %824 = vmatpush1.bf16.msra.mxu1 %v472_v22 }
  0x21   : > { %814 = vmatmul.mubr.msk.bf16.vlgmr.msra.gmra.mrb[0].mxu0 %vm460_vm2, %v452_v23  ;;  %815 = vmatmul.mubr.msk.bf16.vlgmr.msra.gmra.mrb[0].mxu1 %vm460_vm2, %v453_v24  ;;  %v610_v24 = vld [vmem:[#allocation2 + $0x8] sm:$0xff] }
  0x22   : > { %529 = vmatprep.mubr.bf16.mxu1 %v884_v1 }
  0x29   : > { %816 = vmatmul.mubr.msk.bf16.gmra.mrb[4].mxu1 %vm460_vm2, %v454_v26 }
  0xa1   : > { %v550_v29 = vpop.xlane.xlu0 %549 }
  0xa2   : > { %v552_v30 = vadd.f32 %v551_v27, %v550_v29  ;;  %v609_v27 = vld [vmem:[#allocation2] sm:$0xff] }
  0xa4   : > { %v554_v31 = vadd.f32 %v553_v28, %v552_v30  ;;  %v611_v30 = vld [vmem:[#allocation2 + $0x10] sm:$0xff] }
  0xa6   : > { %557 = vperm.xlu0 %851, %v554_v31  }
  0xf4   : > { %v511_v33 = vpop.f32.mrb[0].mxu0  ;;  %v521_v34 = vpop.f32.mrb[0].mxu1 }
  0xf5   : > { %v513_v35 = vpop.f32.mrb[1].mxu0  ;;  %v523_v36 = vpop.f32.mrb[1].mxu1 }
  0xf6   : > { %v515_v37 = vpop.f32.mrb[2].mxu0  ;;  %v525_v38 = vpop.f32.mrb[2].mxu1  ;;  %v616_v39 = vadd.f32 %v523_v36, %v521_v34 }
  0xf7   : > { %v517_v40 = vpop.f32.mrb[3].mxu0  ;;  %v527_v41 = vpop.f32.mrb[3].mxu1 }
  0xf8   : > { %v613_v42 = vadd.f32 %v517_v40, %v515_v37  ;;  %v619_v43 = vadd.f32 %v527_v41, %v525_v38  ;;  %617 = vadd.xlane.f32.xlu1 %v616_v39  ;;  %v645_v40 = vld [vmem:[%s1040_s7] sm:$0xff] }
  0xfc   : > { %614 = vadd.xlane.f32.xlu1 %v613_v42  ;;  %v531_v44 = vpop.f32.mrb[4].mxu1 }
  0xfd   : > { %v533_v45 = vpop.f32.mrb[5].mxu1 }
  0xfe   : > { %v622_v46 = vadd.f32 %v533_v45, %v531_v44  ;;  %v535_v47 = vpop.f32.mrb[6].mxu1  ;;  %v647_v44 = vld [vmem:[%s1040_s7 + $0x10] sm:$0xff] }
  0xff   : > { %v536_v48 = vpop.f32.mrb[7].mxu1 }
 0x100   : > { %620 = vadd.xlane.f32.xlu1 %v619_v43  ;;  %v648_v48 = vld [vmem:[%s1040_s7 + $0x18] sm:$0xff] }
 0x104   : > { %623 = vadd.xlane.f32.xlu1 %v622_v46 }
 0x125   : > { %v558_v49 = vpop.permute.xlu0 %557 }
 0x126   : > { %v560_v50 = vadd.f32 %v558_v49, %v511_v33  ;;  %v561_v51 = vadd.f32 %v558_v49, %v513_v35  ;;  %v646_v33 = vld [vmem:[%s1040_s7 + $0x8] sm:$0xff]  ;;  %v612_v35 = vld [vmem:[#allocation2 + $0x18] sm:$0xff] }
 0x128   : > { %v562_v52 = vrot.slane %v560_v50, 4  ;;  %v568_v53 = vrot.slane %v561_v51, 4 }
 0x12a   : > { %v563_v54 = vmax.f32 %v560_v50, %v562_v52  ;;  %v569_v55 = vmax.f32 %v561_v51, %v568_v53 }
 0x12c   : > { %v564_v56 = vrot.slane %v563_v54, 2  ;;  %v570_v57 = vrot.slane %v569_v55, 2 }
 0x12e   : > { %v565_v58 = vmax.f32 %v563_v54, %v564_v56  ;;  %v571_v59 = vmax.f32 %v569_v55, %v570_v57 }
 0x130   : > { %v566_v60 = vrot.slane %v565_v58, 1  ;;  %v572_v61 = vrot.slane %v571_v59, 1 }
 0x132   : > { %v567_v62 = vmax.f32 %v565_v58, %v566_v60  ;;  %v573_v63 = vmax.f32 %v571_v59, %v572_v61 }
 0x134   : > { %v574_v0 = vsub.f32 %v560_v50, %v567_v62  ;;  %v575_v1 = vsub.f32 %v561_v51, %v573_v63 }
 0x136   : > { %v576_v2 = vmul.f32 1.442695, %v574_v0  ;;  %v578_v3 = vmul.f32 1.442695, %v575_v1 }
 0x138   : > { %852 = vpow2.f32 %v576_v2 }
 0x139   : > { %854 = vpow2.f32 %v578_v3 }
 0x142   : > { %v853_v4 = vpop.eup %852 }
 0x143   : > { %v855_v5 = vpop.eup %854  ;;  %v580_v6 = vrot.slane %v853_v4, 4 }
 0x144   : > { %v586_v7 = vrot.slane %v855_v5, 4 }
 0x145   : > { %v581_v8 = vadd.f32 %v853_v4, %v580_v6 }
 0x146   : > { %v587_v9 = vadd.f32 %v855_v5, %v586_v7 }
 0x147   : > { %v582_v10 = vrot.slane %v581_v8, 2 }
 0x148   : > { %v588_v11 = vrot.slane %v587_v9, 2 }
 0x149   : > { %v583_v12 = vadd.f32 %v582_v10, %v581_v8 }
 0x14a   : > { %v589_v13 = vadd.f32 %v588_v11, %v587_v9 }
 0x14b   : > { %v584_v14 = vrot.slane %v583_v12, 1 }
 0x14c   : > { %v590_v15 = vrot.slane %v589_v13, 1 }
 0x14d   : > { %v585_v16 = vadd.f32 %v584_v14, %v583_v12 }
 0x14e   : > { %v591_v17 = vadd.f32 %v590_v15, %v589_v13 }
 0x14f   : > { %856 = vlog2.f32 %v585_v16 }
 0x150   : > { %858 = vlog2.f32 %v591_v17 }
 0x159   : > { %v857_v18 = vpop.eup %856 }
 0x15a   : > { %v859_v19 = vpop.eup %858  ;;  %v593_v20 = vmul.f32 0.6931472, %v857_v18 }
 0x15b   : > { %v595_v21 = vmul.f32 0.6931472, %v859_v19 }
 0x15c   : > { %v596_v22 = vsub.f32 %v574_v0, %v593_v20 }
 0x15d   : > { %v597_v23 = vsub.f32 %v575_v1, %v595_v21 }
 0x15e   : > { %598 = vst [vmem:[%s425_s26] sm:$0xff] %v596_v22 }
 0x15f   : > { %599 = vst [vmem:[%s425_s26 + $0x8] sm:$0xff] %v597_v23 }
 0x185   : > { %v618_v25 = vpop.xlane.xlu1 %617 }
 0x186   : > { %v626_v26 = vadd.f32 %v618_v25, %v610_v24 }
 0x188   : > { %631 = vst.msk [vmem:[#allocation2 + $0x8] sm:$0xff] %vm604_vm3, %v626_v26 }
 0x189   : > { %v615_v28 = vpop.xlane.xlu1 %614 }
 0x18a   : > { %v625_v29 = vadd.f32 %v615_v28, %v609_v27 }
 0x18c   : > { %630 = vst.msk [vmem:[#allocation2] sm:$0xff] %vm604_vm3, %v625_v29 }
 0x18d   : > { %v621_v31 = vpop.xlane.xlu1 %620 }
 0x18e   : > { %v627_v32 = vadd.f32 %v621_v31, %v611_v30 }
 0x18f   : > { %v638_v34 = vld [vmem:[#allocation2 + $0x8] sm:$0xff] }
 0x190   : > { %v642_v36 = vmul.f32 0.00390625, %v638_v34  ;;  %632 = vst.msk [vmem:[#allocation2 + $0x10] sm:$0xff] %vm604_vm3, %v627_v32 }
 0x191   : > { %v624_v37 = vpop.xlane.xlu1 %623 }
 0x192   : > { %v650_v38 = vadd.f32 %v646_v33, %v642_v36  ;;  %v628_v39 = vadd.f32 %v624_v37, %v612_v35 }
 0x193   : > { %v637_v41 = vld [vmem:[#allocation2] sm:$0xff] }
 0x194   : > { %654 = vst.msk [vmem:[%s431_s15 + $0x8] sm:$0xff] %vm604_vm3, %v650_v38  ;;  %v641_v42 = vmul.f32 0.00390625, %v637_v41  ;;  %633 = vst.msk [vmem:[#allocation2 + $0x18] sm:$0xff] %vm604_vm3, %v628_v39 }
 0x196   : > { %v649_v43 = vadd.f32 %v645_v40, %v641_v42 }
 0x197   : > { %v639_v45 = vld [vmem:[#allocation2 + $0x10] sm:$0xff] }
 0x198   : > { %653 = vst.msk [vmem:[%s431_s15] sm:$0xff] %vm604_vm3, %v649_v43  ;;  %v643_v46 = vmul.f32 0.00390625, %v639_v45 }
 0x19a   : > { %v651_v47 = vadd.f32 %v647_v44, %v643_v46 }
 0x19b   : > { %v640_v49 = vld [vmem:[#allocation2 + $0x18] sm:$0xff] }
 0x19c   : > { %655 = vst.msk [vmem:[%s431_s15 + $0x10] sm:$0xff] %vm604_vm3, %v651_v47  ;;  %v644_v50 = vmul.f32 0.00390625, %v640_v49 }
 0x19e   : > { %v652_v51 = vadd.f32 %v648_v48, %v644_v50 }
 0x1a0   : > { %656 = vst.msk [vmem:[%s431_s15 + $0x18] sm:$0xff] %vm604_vm3, %v652_v51 }
 0x1a1 PF: > { %s20_s11 = sadd.s32 1, %s882_s11   ;;  %s1043_s30 = smov %s878_s10 }
 0x1a2   : > { %p17_p5 = scmp.ge.s32.totalorder %s20_s11, 4   ;;  %s1044_s10 = smov %s1046_s12 }
 0x1a4   :  { %19 = sbr.rel (!%p17_p5) target bundleno = 2 (0x2), region = 108 }

</bundles_post_ra>
